<compile_context>
chip_gen: v6e
topology: v6e:2x2x1
jax: 0.10.0
libtpu: 0.0.40
codegen_flags: <defaults>
</compile_context>

<pallas_src>
import functools

import jax
import jax.numpy as jnp
from jax.experimental import pallas as pl
from jax.experimental.pallas import tpu as pltpu

EPS = 1e-6
LANE = 128
SUBLANE = 8


def _round_up(a, b):
    return pl.cdiv(a, b) * b


def _layernorm_epilogue(z, params, d, needs_mask, out_dtype):
    """z: (tm, D_pad) f32 residual; params rows = [bias, gamma, beta, mask]."""
    gamma = params[1:2, :]
    beta = params[2:3, :]
    mean = jnp.sum(z, axis=-1, keepdims=True) * (1.0 / d)
    centered = z - mean
    var_term = centered * centered
    if needs_mask:
        # Precomputed (1, D_pad) lane mask; padded lanes of z are exactly zero
        # (zero-padded x / W / bias) so only the variance term needs masking.
        var_term = var_term * params[3:4, :]
    # Unbiased (N-1) variance, eps added to std — PyTorch reference semantics.
    var_unbiased = jnp.sum(var_term, axis=-1, keepdims=True) * (1.0 / (d - 1))
    denom = jnp.sqrt(var_unbiased) + EPS
    # Divide -> EUP reciprocal; one Newton step restores ~f32 accuracy cheaply.
    r = pl.reciprocal(denom, approx=True)
    r = r * (2.0 - denom * r)
    return (centered * (gamma * r) + beta).astype(out_dtype)


def _sublayer_resident_kernel(x_ref, wt_ref, params_ref, o_ref, *, d,
                              needs_mask, cast_bf16):
    # x_ref: (tm, D_pad); wt_ref: (D_pad, D_pad) = W^T (in x out), resident;
    # params_ref: (8, D_pad) f32 rows = [bias, gamma, beta, mask, 0...].
    x = x_ref[...]
    x_mm = x.astype(jnp.bfloat16) if cast_bf16 else x
    y = jnp.dot(x_mm, wt_ref[...], preferred_element_type=jnp.float32)

    params = params_ref[...]
    z = x.astype(jnp.float32) + y + params[0:1, :]          # residual + bias
    # TODO(synk): training-mode dropout would use pltpu.prng_random_bits here.
    o_ref[...] = _layernorm_epilogue(z, params, d, needs_mask, o_ref.dtype)


def _sublayer_ktiled_kernel(xk_ref, wt_ref, xrow_ref, params_ref, o_ref,
                            acc_ref, *, d, needs_mask, cast_bf16):
    # xk_ref: (tm, tk) LHS chunk; wt_ref: (tk, D_pad) streamed W^T slab;
    # xrow_ref: (tm, D_pad) full row (for the residual, constant over k);
    # acc_ref: (tm, D_pad) f32 accumulator scratch.
    k = pl.program_id(1)

    @pl.when(k == 0)
    def _():
        acc_ref[...] = jnp.zeros_like(acc_ref)

    xk = xk_ref[...]
    if cast_bf16:
        xk = xk.astype(jnp.bfloat16)
    acc_ref[...] += jnp.dot(xk, wt_ref[...], preferred_element_type=jnp.float32)

    @pl.when(k == pl.num_programs(1) - 1)
    def _():
        params = params_ref[...]
        z = xrow_ref[...].astype(jnp.float32) + acc_ref[...] + params[0:1, :]
        o_ref[...] = _layernorm_epilogue(z, params, d, needs_mask, o_ref.dtype)


def sublayer_connection(x, w, bias, gamma, beta, *, tm_max=None, tk=None,
                        force_k_tiled=False, cast_matmul_to_bf16=False):
    """x: (B, S, D); w: (D, D) PyTorch Linear weight (out, in);
    bias/gamma/beta: (D,). Returns (B, S, D)."""
    B, S, D = x.shape
    assert D >= 2, "unbiased std needs at least 2 features"
    M = B * S
    D_pad = _round_up(D, LANE)
    needs_mask = (D_pad != D)

    # Generation-aware VMEM budget (~128 MiB on v5e/v6e, 64 MiB/TC on v7x).
    try:
        vmem_cap = int(pltpu.get_tpu_info().vmem_capacity_bytes)
    except Exception:
        vmem_cap = 64 << 20
    vmem_budget = int(vmem_cap * 0.85)        # headroom for compiler scratch

    # ---- operands -----------------------------------------------------------
    x2 = x.reshape(M, D)
    wt = w.T                                   # y = x @ W^T + b
    if needs_mask:
        # Lane-dense hidden dim; padded lanes of x/W/bias are zero so the
        # residual's padded lanes are exactly zero (only variance is masked).
        x2 = jnp.pad(x2, ((0, 0), (0, D_pad - D)))
        wt = jnp.pad(wt, ((0, D_pad - D), (0, D_pad - D)))
    if cast_matmul_to_bf16:
        wt = wt.astype(jnp.bfloat16)           # numerics-visible, opt-in

    # bias / gamma / beta / lane-mask packed into a single (8, D_pad) block.
    params = jnp.zeros((8, D_pad), jnp.float32)
    params = params.at[0, :D].set(bias.astype(jnp.float32))
    params = params.at[1, :D].set(gamma.astype(jnp.float32))
    params = params.at[2, :D].set(beta.astype(jnp.float32))
    params = params.at[3, :D].set(1.0)

    in_sz = x2.dtype.itemsize
    out_sz = x.dtype.itemsize
    w_sz = wt.dtype.itemsize
    w_bytes = D_pad * D_pad * w_sz             # single-buffered resident W^T

    # ---- row tile: >= 4 grid steps for megacore + pipelining ---------------
    if tm_max is None:
        tm_max = 1024 if vmem_budget >= (80 << 20) else 512
    tm = max(SUBLANE, min(tm_max, _round_up(pl.cdiv(M, 4), SUBLANE)))

    def resident_need(tm_):
        # double-buffered x/out streams + resident W^T + params + f32 temps
        return (2 * tm_ * D_pad * in_sz + 2 * tm_ * D_pad * out_sz + w_bytes +
                3 * tm_ * D_pad * 4 + 8 * D_pad * 4 + (2 << 20))

    use_k_tiled = force_k_tiled or (w_bytes > vmem_budget // 3)
    if not use_k_tiled:
        while tm > SUBLANE and resident_need(tm) > vmem_budget:
            tm = max(SUBLANE, _round_up(tm // 2, SUBLANE))
        use_k_tiled = resident_need(tm) > vmem_budget

    if not use_k_tiled:
        grid_m = pl.cdiv(M, tm)                # ragged last block, no M pad
        kernel = functools.partial(_sublayer_resident_kernel, d=D,
                                   needs_mask=needs_mask,
                                   cast_bf16=cast_matmul_to_bf16)
        out = pl.pallas_call(
            kernel,
            out_shape=jax.ShapeDtypeStruct((M, D_pad), x.dtype),
            grid_spec=pltpu.PrefetchScalarGridSpec(
                num_scalar_prefetch=0,
                grid=(grid_m,),
                in_specs=[
                    pl.BlockSpec((tm, D_pad), lambda i: (i, 0)),
                    pl.BlockSpec((D_pad, D_pad), lambda i: (0, 0),
                                 pipeline_mode=pl.Buffered(1)),   # resident W^T
                    pl.BlockSpec((8, D_pad), lambda i: (0, 0),
                                 pipeline_mode=pl.Buffered(1)),   # params
                ],
                out_specs=pl.BlockSpec((tm, D_pad), lambda i: (i, 0)),
            ),
            compiler_params=pltpu.CompilerParams(
                dimension_semantics=("parallel",),
                vmem_limit_bytes=vmem_budget,
            ),
        )(x2, wt, params)
    else:
        # ---- K-tiled fallback: stream (tk, D_pad) weight slabs -------------
        if tk is None:
            if D_pad % 512 == 0 and D_pad > 512:
                tk = 512
            elif D_pad % 256 == 0:
                tk = 256
            else:
                tk = 128
        tk = min(tk, D_pad)
        assert D_pad % tk == 0
        grid_k = D_pad // tk

        def ktiled_need(tm_):
            return (2 * tm_ * tk * in_sz + 2 * tk * D_pad * w_sz +
                    2 * tm_ * D_pad * in_sz + 2 * tm_ * D_pad * out_sz +
                    tm_ * D_pad * 4 + 2 * tm_ * D_pad * 4 +
                    8 * D_pad * 4 + (2 << 20))

        while tm > SUBLANE and ktiled_need(tm) > vmem_budget:
            tm = max(SUBLANE, _round_up(tm // 2, SUBLANE))
        grid_m = pl.cdiv(M, tm)

        kernel = functools.partial(_sublayer_ktiled_kernel, d=D,
                                   needs_mask=needs_mask,
                                   cast_bf16=cast_matmul_to_bf16)
        out = pl.pallas_call(
            kernel,
            out_shape=jax.ShapeDtypeStruct((M, D_pad), x.dtype),
            grid_spec=pltpu.PrefetchScalarGridSpec(
                num_scalar_prefetch=0,
                grid=(grid_m, grid_k),
                in_specs=[
                    pl.BlockSpec((tm, tk), lambda i, k: (i, k)),       # LHS
                    pl.BlockSpec((tk, D_pad), lambda i, k: (k, 0)),    # W^T slab
                    pl.BlockSpec((tm, D_pad), lambda i, k: (i, 0)),    # residual
                    pl.BlockSpec((8, D_pad), lambda i, k: (0, 0),
                                 pipeline_mode=pl.Buffered(1)),        # params
                ],
                out_specs=pl.BlockSpec((tm, D_pad), lambda i, k: (i, 0)),
                scratch_shapes=[pltpu.VMEM((tm, D_pad), jnp.float32)],
            ),
            compiler_params=pltpu.CompilerParams(
                dimension_semantics=("parallel", "arbitrary"),
                vmem_limit_bytes=vmem_budget,
            ),
        )(x2, wt, x2, params)

    return out[:M, :D].reshape(B, S, D)


def _reference(x, w, bias, gamma, beta):
    """Pure-JAX reference mirroring the PyTorch forward (eval mode)."""
    xf = x.astype(jnp.float32)
    y = xf @ w.astype(jnp.float32).T + bias.astype(jnp.float32)
    z = xf + y
    mean = jnp.mean(z, axis=-1, keepdims=True)
    centered = z - mean
    var = jnp.sum(centered * centered, axis=-1, keepdims=True) / (z.shape[-1] - 1)
    std = jnp.sqrt(var)
    return gamma * centered / (std + EPS) + beta


def _make_inputs(key, B, S, D):
    kx, kw, kb = jax.random.split(key, 3)
    x = jax.random.normal(kx, (B, S, D), dtype=jnp.float32)
    w = jax.random.normal(kw, (D, D), dtype=jnp.float32) * (1.0 / jnp.sqrt(D))
    bias = jax.random.normal(kb, (D,), dtype=jnp.float32) * 0.01
    gamma = jnp.ones((D,), dtype=jnp.float32)   # LayerNorm a
    beta = jnp.zeros((D,), dtype=jnp.float32)   # LayerNorm b
    return x, w, bias, gamma, beta


if __name__ == "__main__":
    key = jax.random.PRNGKey(0)
    k1, k2 = jax.random.split(key, 2)

    # 1) Resident-weight fast path (batch=2, seq=8, hidden=32 -> padded to 128).
    B, S, D = 2, 8, 32
    x, w, bias, gamma, beta = _make_inputs(k1, B, S, D)
    out = jax.block_until_ready(sublayer_connection(x, w, bias, gamma, beta))
    ref = _reference(x, w, bias, gamma, beta)
    assert out.shape == (B, S, D)
    assert jnp.allclose(out, ref, atol=1e-4, rtol=1e-4)

    # 2) K-tiled fallback path (forced; D=160 pads to 256, tk=128 -> 2 K steps).
    B2, S2, D2 = 2, 8, 160
    x2, w2, bias2, gamma2, beta2 = _make_inputs(k2, B2, S2, D2)
    out2 = jax.block_until_ready(
        sublayer_connection(x2, w2, bias2, gamma2, beta2,
                            force_k_tiled=True, tk=128))
    ref2 = _reference(x2, w2, bias2, gamma2, beta2)
    assert out2.shape == (B2, S2, D2)
    assert jnp.allclose(out2, ref2, atol=1e-4, rtol=1e-4)

    print("KERNEL_OK")
</pallas_src>

<mosaic_0001>
module attributes {stable_mosaic.version = 11 : i64} {
  func.func @_sublayer_resident_kernel(%arg0: i32, %arg1: memref<8x128xf32, #tpu.memory_space<vmem>>, %arg2: memref<128x128xf32, #tpu.memory_space<vmem>>, %arg3: memref<8x128xf32, #tpu.memory_space<vmem>>, %arg4: memref<8x128xf32, #tpu.memory_space<vmem>>) attributes {dimension_semantics = [#tpu.dimension_semantics<parallel>], iteration_bounds = array<i64: 2>, scalar_prefetch = 0 : i64, scratch_operands = 0 : i64, tpu.core_type = #tpu.core_type<tc>, window_params = [{transform_indices = @transform_0, window_bounds = array<i64: 8, 128>}, {pipeline_mode = #tpu.pipeline_mode<synchronous>, transform_indices = @transform_1, window_bounds = array<i64: 128, 128>}, {pipeline_mode = #tpu.pipeline_mode<synchronous>, transform_indices = @transform_2, window_bounds = array<i64: 8, 128>}, {transform_indices = @transform_3, window_bounds = array<i64: 8, 128>}]} {
    %c0 = arith.constant 0 : index
    %c0_0 = arith.constant 0 : index
    %0 = vector.load %arg1[%c0, %c0_0] : memref<8x128xf32, #tpu.memory_space<vmem>>, vector<8x128xf32>
    %c0_1 = arith.constant 0 : index
    %c0_2 = arith.constant 0 : index
    %1 = vector.load %arg2[%c0_1, %c0_2] : memref<128x128xf32, #tpu.memory_space<vmem>>, vector<128x128xf32>
    %cst = arith.constant dense<0.000000e+00> : vector<8x128xf32>
    %2 = tpu.matmul %0, %1, %cst {dimension_numbers = #tpu.dot_dimension_numbers<[1], [0], [0], [1], [0, 0, 1, 1], [], []>} : vector<8x128xf32>, vector<128x128xf32>, vector<8x128xf32> -> vector<8x128xf32>
    %c0_3 = arith.constant 0 : index
    %c0_4 = arith.constant 0 : index
    %3 = vector.load %arg3[%c0_3, %c0_4] : memref<8x128xf32, #tpu.memory_space<vmem>>, vector<8x128xf32>
    %4 = arith.addf %0, %2 : vector<8x128xf32>
    %5 = vector.extract_strided_slice %3 {offsets = [0, 0], sizes = [1, 128], strides = [1, 1]} : vector<8x128xf32> to vector<1x128xf32>
    %6 = vector.broadcast %5 : vector<1x128xf32> to vector<8x128xf32>
    %7 = arith.addf %4, %6 : vector<8x128xf32>
    %8 = vector.extract_strided_slice %3 {offsets = [1, 0], sizes = [1, 128], strides = [1, 1]} : vector<8x128xf32> to vector<1x128xf32>
    %9 = vector.extract_strided_slice %3 {offsets = [2, 0], sizes = [1, 128], strides = [1, 1]} : vector<8x128xf32> to vector<1x128xf32>
    %cst_5 = arith.constant dense<0.000000e+00> : vector<8xf32>
    %10 = vector.multi_reduction <add>, %7, %cst_5 [1] : vector<8x128xf32> to vector<8xf32>
    %11 = vector.shape_cast %10 : vector<8xf32> to vector<8x1xf32>
    %cst_6 = arith.constant 3.125000e-02 : f32
    %12 = vector.broadcast %cst_6 : f32 to vector<8x1xf32>
    %13 = arith.mulf %11, %12 : vector<8x1xf32>
    %14 = vector.broadcast %13 : vector<8x1xf32> to vector<8x128xf32>
    %15 = arith.subf %7, %14 : vector<8x128xf32>
    %16 = arith.mulf %15, %15 : vector<8x128xf32>
    %17 = vector.extract_strided_slice %3 {offsets = [3, 0], sizes = [1, 128], strides = [1, 1]} : vector<8x128xf32> to vector<1x128xf32>
    %18 = vector.broadcast %17 : vector<1x128xf32> to vector<8x128xf32>
    %19 = arith.mulf %16, %18 : vector<8x128xf32>
    %cst_7 = arith.constant dense<0.000000e+00> : vector<8xf32>
    %20 = vector.multi_reduction <add>, %19, %cst_7 [1] : vector<8x128xf32> to vector<8xf32>
    %21 = vector.shape_cast %20 : vector<8xf32> to vector<8x1xf32>
    %cst_8 = arith.constant 0.0322580636 : f32
    %22 = vector.broadcast %cst_8 : f32 to vector<8x1xf32>
    %23 = arith.mulf %21, %22 : vector<8x1xf32>
    %24 = math.sqrt %23 : vector<8x1xf32>
    %cst_9 = arith.constant 9.99999997E-7 : f32
    %25 = vector.broadcast %cst_9 : f32 to vector<8x1xf32>
    %26 = arith.addf %24, %25 : vector<8x1xf32>
    %27 = tpu.reciprocal %26 {approx = true} : vector<8x1xf32> -> vector<8x1xf32>
    %28 = arith.mulf %26, %27 : vector<8x1xf32>
    %cst_10 = arith.constant 2.000000e+00 : f32
    %29 = vector.broadcast %cst_10 : f32 to vector<8x1xf32>
    %30 = arith.subf %29, %28 : vector<8x1xf32>
    %31 = arith.mulf %27, %30 : vector<8x1xf32>
    %32 = vector.broadcast %8 : vector<1x128xf32> to vector<8x128xf32>
    %33 = vector.broadcast %31 : vector<8x1xf32> to vector<8x128xf32>
    %34 = arith.mulf %32, %33 : vector<8x128xf32>
    %35 = arith.mulf %15, %34 : vector<8x128xf32>
    %36 = vector.broadcast %9 : vector<1x128xf32> to vector<8x128xf32>
    %37 = arith.addf %35, %36 : vector<8x128xf32>
    %c0_11 = arith.constant 0 : index
    %c0_12 = arith.constant 0 : index
    %38 = vector.load %arg4[%c0_11, %c0_12] : memref<8x128xf32, #tpu.memory_space<vmem>>, vector<8x128xf32>
    tpu.vector_store %arg4[%c0_11, %c0_12], %37 {strides = array<i32>} : memref<8x128xf32, #tpu.memory_space<vmem>>, vector<8x128xf32>,
    return
  }
  func.func @transform_0(%arg0: i32) -> (i32, i32) {
    %c0_i32 = arith.constant 0 : i32
    %c0_i32_0 = arith.constant 0 : i32
    return %arg0, %c0_i32 : i32, i32
  }
  func.func @transform_1(%arg0: i32) -> (i32, i32) {
    %c0_i32 = arith.constant 0 : i32
    %c0_i32_0 = arith.constant 0 : i32
    %c0_i32_1 = arith.constant 0 : i32
    return %c0_i32, %c0_i32_0 : i32, i32
  }
  func.func @transform_2(%arg0: i32) -> (i32, i32) {
    %c0_i32 = arith.constant 0 : i32
    %c0_i32_0 = arith.constant 0 : i32
    %c0_i32_1 = arith.constant 0 : i32
    return %c0_i32, %c0_i32_0 : i32, i32
  }
  func.func @transform_3(%arg0: i32) -> (i32, i32) {
    %c0_i32 = arith.constant 0 : i32
    %c0_i32_0 = arith.constant 0 : i32
    return %arg0, %c0_i32 : i32, i32
  }
}

</mosaic_0001>

<bundles_post_ra>
// kernel: tpu_custom_call.1
= control target key start
LH: loop header
LB: loop body
LE: loop exit
PB: predicated region body
PF: predicated region fallthrough
CT: control target
= control target key end

     0   :  { %8 = vsyncpa [#allocation3], 0  ;;  %s940_s0 = inlined_call_operand.hbm [shape: f32[16,128], index: 0, kind: input, shape index: {}]   ;;  %s941_s1 = inlined_call_operand.hbm [shape: f32[128,128], index: 1, kind: input, shape index: {}]   ;;  %s942_s2 = inlined_call_operand.hbm [shape: f32[8,128], index: 2, kind: input, shape index: {}]   ;;  %s943_s3 = inlined_call_operand.hbm [shape: f32[16,128], index: 3, kind: output, shape index: {}]  }
   0x1   :  { %10 = vsyncpa [#allocation3 + $0x1], 0 }
   0x2   :  { %11 = vsyncpa [#allocation6], 0 }
   0x3   :  { %12 = vsyncpa [#allocation4], 0 }
   0x4   :  { %14 = vsyncpa [#allocation4 + $0x1], 0  ;;  %s768_s12 = smov 0   ;;  %s770_s13 = smov 0  }
   0x5   :  { %s772_s14 = smov 0   ;;  %s774_s15 = smov 0  }
   0x6 LB: > { %s789_s16 = sadd.s32 4294967295, %s738_s15   ;;  %s447_s17 = sadd.s32 4294967294, %s738_s15   ;;  %s738_s15 = sphi %s774_s15, %s965_s15   ;;  %s734_s14 = sphi %s772_s14, %s964_s14   ;;  %s730_s13 = sphi %s770_s13, %s963_s13   ;;  %s726_s12 = sphi %s768_s12, %s962_s12  }
   0x7   : > { %p40_p0 = scmp.ne.s32.totalorder %s730_s13, %s726_s12  ;;  %p944_p1 = scmp.eq.s32.totalorder %s789_s16, 0 }
   0x8   : > { %p112_p3 = scmp.eq.s32.totalorder %s447_s17, 1  ;;  %p448_p5 = scmp.ge.s32.totalorder %s738_s15, 1 }
   0x9   : > { %p798_p4 = por %p944_p1, %p40_p0  ;;  %p119_p7 = scmp.lt.s32.totalorder %s738_s15, 3 }
   0xa   : > { %p803_p6 = por %p112_p3, %p40_p0  ;;  %s740_s21 = smov [#allocation5]  }
   0xb   : > { %s948_s18 = scalar_select %p798_p4, 1, 0 }
   0xc   : > { %s949_s19 = scalar_select %p803_p6, 1, 0 }
   0xd   : > { %p808_p8 = pnand %p448_p5, %p119_p7  ;;  %s131_s22 = sshll.u32 %s740_s21, 4  ;;  %s132_s22 = int_to_ptr.vmem [resolvable:$true] %s131_s22 }
   0xe   : > { %s741_s24 = smov [#allocation7]   ;;  %s601_s26 = scalar_lea.vmem %s132_s22, 2048 }
   0xf   : > { %s950_s20 = scalar_select %p808_p8, 1, 0 }
  0x10   : > { %p527_p9 = pneg %p808_p8  ;;  %s145_s25 = sshll.u32 %s741_s24, 4  ;;  %s146_s25 = int_to_ptr.vmem [resolvable:$true] %s145_s25 }
  0x11   : > { %p602_p13 = scmp.ne.s32.totalorder %s132_s22, %s601_s26  ;;  %p609_p5 = scmp.lt.s32.totalorder %s132_s22, %s132_s22 }
  0x12   : > { %p817_p11 = pnand %p527_p9, %p944_p1  ;;  %p610_p7 = scmp.lt.s32.totalorder %s601_s26, %s601_s26 }
  0x14   : > { %p592_p12 = pneg %p817_p11  ;;  %p611_p10 = por %p610_p7, %p609_p5 }
  0x16   : > { %p604_p0 = pnand %p602_p13, %p592_p12 }
  0x18   : > { %p605_p3 = pneg %p604_p0 }
  0x1a   : > { %p612_p9 = pnand %p611_p10, %p605_p3 }
  0x1c   : > { %615 = shalt.err (!%p612_p9)
}
  0x1d   : > { %s742_s27 = smov 128   ;;  %s743_s28 = smov 8  }
  0x1e   : > { %530 = dma.hbm_to_vmem [thread:$0]  (!%p817_p11), %s941_s1, 2048, %s132_s22, [#allocation6], %s742_s27, %s742_s27, %s743_s28  }
  0x1f   : > { %s627_s4 = scalar_lea.vmem %s146_s25, 128  ;;  %p635_p2 = scmp.lt.s32.totalorder %s146_s25, %s146_s25 }
  0x20   : > { %p628_p1 = scmp.ne.s32.totalorder %s146_s25, %s627_s4  ;;  %p636_p6 = scmp.lt.s32.totalorder %s627_s4, %s627_s4 }
  0x22   : > { %p630_p13 = pnand %p628_p1, %p592_p12  ;;  %p637_p5 = por %p636_p6, %p635_p2 }
  0x24   : > { %p631_p0 = pneg %p630_p13 }
  0x26   : > { %p638_p10 = pnand %p637_p5, %p631_p0 }
  0x28   : > { %641 = shalt.err (!%p638_p10)
}
  0x29   : > { %533 = dma.hbm_to_vmem [thread:$0]  (!%p817_p11), %s942_s2, 128, %s146_s25, [#allocation6]  }
  0x2a   : > { %s840_s7 = sadd.s32 1, %s738_s15   ;;  %s27_s8 = sadd.s32 1, %s734_s14 }
  0x2b   : > { %s24_s9 = ssub.s32 %s738_s15, %s840_s7  ;;  %p34_p1 = scmp.ne.s32.totalorder %s734_s14, %s730_s13 }
  0x2c   : > { %p25_p2 = scmp.eq.s32.totalorder %s24_s9, 0  ;;  %p35_p6 = scmp.eq.s32.totalorder %s738_s15, 0 }
  0x2d   : > { %p952_p12 = scmp.eq.s32.totalorder %s789_s16, 1  ;;  %p544_p7 = scmp.lt.s32.totalorder %s738_s15, 2 }
  0x2e   : > { %s856_s11 = scalar_select %p25_p2, %s734_s14, %s27_s8  }
  0x2f   : > { %p850_p3 = por %p952_p12, %p34_p1  ;;  %p36_p9 = por %p35_p6, %p34_p1 }
  0x30   : > { %s156_s17 = sand.u32 1, %s734_s14   ;;  %s453_s22 = sshll.u32 %s738_s15, 7 }
  0x31   : > { %s953_s10 = scalar_select %p850_p3, 1, 0 }
  0x32   : > { %s452_s21 = sshll.u32 %s156_s17, 3  ;;  %s863_s25 = scalar_lea.hbm %s940_s0, %s453_s22 }
  0x33   : > { %s160_s26 = scalar_lea.vmem [#allocation2], %s452_s21  ;;  %p865_p11 = pnand %p544_p7, %p36_p9 }
  0x34   : > { %s167_s27 = sshll.u32 %s160_s26, 4  ;;  %s157_s29 = scalar_lea.sflag [#allocation3], %s156_s17  ;;  %s168_s27 = int_to_ptr.vmem [resolvable:$true] %s167_s27 }
  0x35   : > { %s642_s30 = scalar_lea.hbm %s863_s25, 128  ;;  %p644_p0 = pneg %p865_p11 }
  0x36   : > { %p643_p13 = scmp.ne.s32.totalorder %s863_s25, %s642_s30  ;;  %s647_s6 = scalar_lea.hbm %s940_s0, 256 }
  0x37   : > { %p648_p1 = scmp.lt.s32.totalorder %s863_s25, %s940_s0  ;;  %p649_p2 = scmp.lt.s32.totalorder %s647_s6, %s642_s30 }
  0x38   : > { %p645_p5 = pnand %p644_p0, %p643_p13 }
  0x39   : > { %p650_p6 = por %p649_p2, %p648_p1 }
  0x3a   : > { %p646_p10 = pneg %p645_p5 }
  0x3c   : > { %p651_p12 = pnand %p650_p6, %p646_p10 }
  0x3e   : > { %654 = shalt.err (!%p651_p12)
}
  0x3f   : > { %s655_s21 = scalar_lea.vmem %s168_s27, 128  ;;  %s744_s17 = smov [#allocation2]  }
  0x40   : > { %p656_p7 = scmp.ne.s32.totalorder %s168_s27, %s655_s21  ;;  %s660_s22 = sshll.u32 %s744_s17, 4  ;;  %s661_s22 = int_to_ptr.vmem [resolvable:$false] %s660_s22 }
  0x41   : > { %s662_s23 = scalar_lea.vmem %s661_s22, 256  ;;  %p663_p13 = scmp.lt.s32.totalorder %s168_s27, %s661_s22 }
  0x42   : > { %p658_p9 = pnand %p656_p7, %p644_p0  ;;  %p664_p5 = scmp.lt.s32.totalorder %s662_s23, %s655_s21 }
  0x44   : > { %p659_p3 = pneg %p658_p9  ;;  %p665_p4 = por %p664_p5, %p663_p13 }
  0x46   : > { %p666_p8 = pnand %p665_p4, %p659_p3 }
  0x48   : > { %669 = shalt.err (!%p666_p8)
}
  0x49   : > { %537 = dma.hbm_to_vmem [thread:$0]  (!%p865_p11), %s863_s25, 128, %s168_s27, %s157_s29  }
  0x4a   : > { %p955_p10 = scmp.ne.s32.totalorder %s950_s20, 0 }
  0x4b   : > { %s886_s24 = sand.u32 (!%p955_p10), 1, %s730_s13   ;;  %p956_p4 = scmp.ne.s32.totalorder (!%p955_p10), %s948_s18, 0 }
  0x4c   : > { %176 = sbr.rel (%p955_p10) target bundleno = 660 (0x294), region = 32  ;;  %s455_s26 = sshll.u32 (!%p955_p10), %s886_s24, 3 }
  0x4d   : > { %s179_s30 = scalar_lea.sflag (!%p955_p10), [#allocation3], %s886_s24  ;;  %s892_s4 = scalar_lea.vmem (!%p955_p10), [#allocation2], %s455_s26 }
  0x51   : > { %713 = dma.done.wait (%p956_p4), %s179_s30, 128  }
  0x52   : > { %715 = vsyncadd (%p956_p4), %s179_s30, 4294967168  ;;  %p957_p8 = scmp.eq.s32.totalorder %s789_s16, 0 }
  0x54   : > { %717 = dma.done.wait (%p957_p8), [#allocation6], 2176   ;;  %p958_p3 = pmov %p957_p8 }
  0x55   : > { %v745_v0 = vmov 0.0   ;;  %vm746_vm0 = vmmov 0   ;;  %v229_v1 = vld [vmem:[#allocation5 + $0x78] sm:$0xff]  ;;  %v228_v2 = vld [vmem:[#allocation5 + $0x70] sm:$0xff]  ;;  %v227_v3 = vld [vmem:[#allocation5 + $0x68] sm:$0xff]  ;;  %v302_v18 = vlaneseq  ;;  %s460_s18 = sshll.u32 %s789_s16, 7 }
  0x56   : > { %719 = vsyncadd (%p958_p3), [#allocation6], 4294965120  ;;  %480 = vmatprep.subr.mxu0 %v745_v0  ;;  %512 = vmatprep.mubr.msk.f32.mxu0 %vm746_vm0, %v745_v0  ;;  %v226_v4 = vld [vmem:[#allocation5 + $0x60] sm:$0xff]  ;;  %v225_v5 = vld [vmem:[#allocation5 + $0x58] sm:$0xff]  ;;  %s212_s20 = scalar_lea.vmem [#allocation8], %s455_s26  ;;  %s356_s29 = scalar_lea.hbm %s943_s3, %s460_s18 }
  0x57   : > { %481 = vmatpush3.msra.mxu0 %v229_v1  ;;  %v224_v6 = vld [vmem:[#allocation5 + $0x50] sm:$0xff]  ;;  %v223_v7 = vld [vmem:[#allocation5 + $0x48] sm:$0xff]  ;;  %v222_v8 = vld [vmem:[#allocation5 + $0x40] sm:$0xff]  ;;  %v303_v19 = vshrl.u32 %v302_v18, 7  ;;  %s358_s25 = sshll.u32 %s212_s20, 4  ;;  %s345_s5 = scalar_lea.sflag [#allocation4], %s886_s24  ;;  %s359_s25 = int_to_ptr.vmem [resolvable:$true] %s358_s25 }
  0x58   : > { %482 = vmatprep.subr.mxu0 %v745_v0  ;;  %v221_v9 = vld [vmem:[#allocation5 + $0x38] sm:$0xff]  ;;  %v220_v10 = vld [vmem:[#allocation5 + $0x30] sm:$0xff]  ;;  %v219_v11 = vld [vmem:[#allocation5 + $0x28] sm:$0xff]  ;;  %s670_s6 = scalar_lea.vmem %s359_s25, 128  ;;  %p959_p0 = scmp.ne.s32.totalorder %s953_s10, 0 }
  0x59   : > { %483 = vmatpush3.msra.mxu0 %v228_v2  ;;  %v218_v12 = vld [vmem:[#allocation5 + $0x20] sm:$0xff]  ;;  %v217_v13 = vld [vmem:[#allocation5 + $0x18] sm:$0xff]  ;;  %v216_v14 = vld [vmem:[#allocation5 + $0x10] sm:$0xff]  ;;  %v304_v20 = vsub.s32 0, %v303_v19  ;;  %v314_v27 = vsub.s32 3, %v303_v19  ;;  %v334_v42 = vsub.s32 1, %v303_v19  ;;  %p671_p11 = scmp.ne.s32.totalorder %s359_s25, %s670_s6 }
  0x5a   : > { %484 = vmatprep.subr.mxu0 %v745_v0  ;;  %v215_v15 = vld [vmem:[#allocation5 + $0x8] sm:$0xff]  ;;  %v214_v16 = vld [vmem:[#allocation5] sm:$0xff]  ;;  %v213_v17 = vld [vmem:[%s892_s4] sm:$0xff]  ;;  %v340_v46 = vsub.s32 2, %v303_v19  ;;  %s747_s8 = smov [#allocation8]  }
  0x5b   : > { %485 = vmatpush3.msra.mxu0 %v227_v3  ;;  %v300_v21 = vld [vmem:[#allocation7] sm:$0xff]  ;;  %p672_p1 = pnand %p671_p11, %p959_p0  ;;  %s674_s9 = sshll.u32 %s747_s8, 4  ;;  %s675_s9 = int_to_ptr.vmem [resolvable:$false] %s674_s9 }
  0x5c   : > { %486 = vmatprep.subr.mxu0 %v745_v0  ;;  %v305_v22 = vrot.slane %v300_v21, %v304_v20  ;;  %v315_v31 = vrot.slane %v300_v21, %v314_v27  ;;  %v335_v45 = vrot.slane %v300_v21, %v334_v42  ;;  %v341_v49 = vrot.slane %v300_v21, %v340_v46  ;;  %s676_s16 = scalar_lea.vmem %s675_s9, 256  ;;  %p677_p6 = scmp.lt.s32.totalorder %s359_s25, %s675_s9 }
  0x5d   : > { %487 = vmatpush3.msra.mxu0 %v226_v4  ;;  %p673_p2 = pneg %p672_p1  ;;  %p678_p12 = scmp.lt.s32.totalorder %s676_s16, %s670_s6 }
  0x5e   : > { %488 = vmatprep.subr.mxu0 %v745_v0 }
  0x5f   : > { %489 = vmatpush3.msra.mxu0 %v225_v5  ;;  %p679_p7 = por %p678_p12, %p677_p6 }
  0x60   : > { %490 = vmatprep.subr.mxu0 %v745_v0 }
  0x61   : > { %491 = vmatpush3.msra.mxu0 %v224_v6  ;;  %p680_p9 = pnand %p679_p7, %p673_p2 }
  0x62   : > { %492 = vmatprep.subr.mxu0 %v745_v0 }
  0x63   : > { %493 = vmatpush3.msra.mxu0 %v223_v7 }
  0x64   : > { %494 = vmatprep.subr.mxu0 %v745_v0 }
  0x65   : > { %495 = vmatpush3.msra.mxu0 %v222_v8 }
  0x66   : > { %496 = vmatprep.subr.mxu0 %v745_v0 }
  0x67   : > { %497 = vmatpush3.msra.mxu0 %v221_v9 }
  0x68   : > { %498 = vmatprep.subr.mxu0 %v745_v0 }
  0x69   : > { %499 = vmatpush3.msra.mxu0 %v220_v10 }
  0x6a   : > { %500 = vmatprep.subr.mxu0 %v745_v0 }
  0x6b   : > { %501 = vmatpush3.msra.mxu0 %v219_v11 }
  0x6c   : > { %502 = vmatprep.subr.mxu0 %v745_v0 }
  0x6d   : > { %503 = vmatpush3.msra.mxu0 %v218_v12 }
  0x6e   : > { %504 = vmatprep.subr.mxu0 %v745_v0 }
  0x6f   : > { %505 = vmatpush3.msra.mxu0 %v217_v13 }
  0x70   : > { %506 = vmatprep.subr.mxu0 %v745_v0 }
  0x71   : > { %507 = vmatpush3.msra.mxu0 %v216_v14 }
  0x72   : > { %508 = vmatprep.subr.mxu0 %v745_v0 }
  0x73   : > { %509 = vmatpush3.msra.mxu0 %v215_v15 }
  0x74   : > { %510 = vmatprep.subr.mxu0 %v745_v0 }
  0x75   : > { %511 = vmatpush3.msra.mxu0 %v214_v16 }
  0x76   : > { %513 = vmatmul.mubr.f32.vlgmr.msra.gmra.mxu0 %v213_v17 }
 0x136   : > { %v296_v23 = vpop.f32.mrf.mxu0 }
 0x137   : > { %v301_v24 = vadd.f32 %v296_v23, %v213_v17 }
 0x138   : > { %v514_v25 = vpop.f32.mrf.mxu0 }
 0x139   : > { %v306_v26 = vadd.f32 %v305_v22, %v301_v24 }
 0x13b   : > { %307 = vadd.xlane.f32.xlu0 %v306_v26 }
 0x1c4   : > { %v308_v28 = vpop.xlane.xlu0 %307 }
 0x1c5   : > { %v309_v29 = vmul.f32 0.03125, %v308_v28 }
 0x1c7   : > { %v310_v30 = vsub.f32 %v306_v26, %v309_v29 }
 0x1c9   : > { %v311_v32 = vmul.f32 %v310_v30, %v310_v30 }
 0x1cb   : > { %v316_v33 = vmul.f32 %v315_v31, %v311_v32 }
 0x1cd   : > { %317 = vadd.xlane.f32.xlu0 %v316_v33 }
 0x256   : > { %v318_v34 = vpop.xlane.xlu0 %317 }
 0x257   : > { %v319_v35 = vmul.f32 0.032258064, %v318_v34 }
 0x259   : > { %586 = vrsqrt.f32 %v319_v35  ;;  %vm322_vm1 = vcmp.eq.f32.partialorder %v319_v35, inf  ;;  %v325_v38 = vand.u32 2147483648, %v319_v35  ;;  %vm324_vm2 = vcmp.eq.f32.partialorder %v319_v35, 0.0 }
 0x266   : > { %v587_v36 = vpop.eup %586 }
 0x267   : > { %v321_v37 = vmul.f32 %v587_v36, %v319_v35 }
 0x269   : > { %v323_v39 = vsel %vm322_vm1, %v319_v35, %v321_v37 }
 0x26a   : > { %v326_v40 = vsel %vm324_vm2, %v325_v38, %v323_v39 }
 0x26b   : > { %v327_v41 = vadd.f32 1e-06, %v326_v40 }
 0x26d   : > { %588 = vrcp.f32 %v327_v41 }
 0x27a   : > { %v589_v43 = vpop.eup %588 }
 0x27b   : > { %v329_v44 = vmul.f32 %v589_v43, %v327_v41 }
 0x27d   : > { %v330_v47 = vsub.f32 2.0, %v329_v44 }
 0x27f   : > { %v331_v48 = vmul.f32 %v589_v43, %v330_v47 }
 0x281   : > { %v336_v50 = vmul.f32 %v335_v45, %v331_v48 }
 0x283   : > { %v337_v51 = vmul.f32 %v336_v50, %v310_v30 }
 0x285   : > { %v342_v52 = vadd.f32 %v341_v49, %v337_v51 }
 0x287   : > { %343 = vst [vmem:[%s212_s20] sm:$0xff] %v342_v52 }
 0x288   : > { %683 = shalt.err (!%p680_p9)
}
 0x289   : > { %s684_s21 = scalar_lea.hbm %s356_s29, 128  ;;  %s688_s23 = scalar_lea.hbm %s943_s3, 256 }
 0x28a   : > { %p685_p13 = scmp.ne.s32.totalorder %s356_s29, %s684_s21  ;;  %p689_p4 = scmp.lt.s32.totalorder %s356_s29, %s943_s3 }
 0x28b   : > { %p690_p8 = scmp.lt.s32.totalorder %s688_s23, %s684_s21 }
 0x28c   : > { %p686_p5 = pnand %p685_p13, %p959_p0 }
 0x28d   : > { %p691_p3 = por %p690_p8, %p689_p4 }
 0x28e   : > { %p687_p10 = pneg %p686_p5 }
 0x290   : > { %p692_p11 = pnand %p691_p3, %p687_p10 }
 0x292   : > { %695 = shalt.err (!%p692_p11)
}
 0x293   : > { %525 = dma.vmem_to_hbm [thread:$0]  (%p959_p0), %s359_s25, 128, %s356_s29, %s345_s5  }
 0x294 PF: > { %s370_s30 = sand.u32 1, %s726_s12   ;;  %p960_p1 = scmp.ne.s32.totalorder %s949_s19, 0 }
 0x295   : > { %p961_p2 = scmp.ge.s32.totalorder %s738_s15, 2  ;;  %s371_s4 = scalar_lea.sflag [#allocation4], %s370_s30 }
 0x297   : > { %p539_p6 = pnand %p961_p2, %p960_p1 }
 0x299   : > { %p540_p12 = pneg %p539_p6 }
 0x29b   : > { %721 = dma.done.wait (%p540_p12), %s371_s4, 128  }
 0x29c   : > { %723 = vsyncadd (%p540_p12), %s371_s4, 4294967168  ;;  %p17_p7 = scmp.ge.s32.totalorder %s840_s7, 4   ;;  %s962_s12 = smov %s730_s13 }
 0x29d   : > { %s963_s13 = smov %s734_s14  ;;  %s964_s14 = smov %s856_s11 }
 0x29e   : > { %s965_s15 = smov %s840_s7  ;;  %19 = sbr.rel (!%p17_p7) target bundleno = 6 (0x6), region = 85 }
 0x2a3   :  { %376 = vsyncpa [#allocation3], 1 }
 0x2a4   :  { %378 = vsyncpa [#allocation3 + $0x1], 1 }
 0x2a5   :  { %379 = vsyncpa [#allocation6], 1 }
 0x2a6   :  { %380 = vsyncpa [#allocation4], 1 }
 0x2a7   :  { %382 = vsyncpa [#allocation4 + $0x1], 1 }

</bundles_post_ra>
